<compile_context>
chip_gen: v5e
topology: v5e:2x2
jax: 0.10.0
libtpu: 0.0.40
codegen_flags: <defaults>
</compile_context>

<pallas_src>
import functools

import jax
import jax.numpy as jnp
from jax import lax
from jax.experimental import pallas as pl
from jax.experimental.pallas import tpu as pltpu

DIVIDE = 5      # first 5 columns -> MSE, remaining -> BCE-with-logits
N_COLS = 8      # pred.view(-1, 2, 8)
Z_DIM = 384     # z.view(-1, 2, 384)


def _mix_loss_kernel(pred_ref, t16_ref, w16_ref, z_ref, out_ref,
                     acc1_ref, acc2_ref, *, nt_per_core, tile_b, batch):
    c = pl.program_id(0)          # core-split axis ("parallel")
    i = pl.program_id(1)          # batch-tile axis ("arbitrary", accumulating)

    @pl.when(i == 0)
    def _init():
        acc1_ref[...] = jnp.zeros_like(acc1_ref)
        acc2_ref[...] = jnp.zeros_like(acc2_ref)

    # Global tile handled by this (core, step).  The index_map clamps the DMA
    # to the last in-range tile; this mask drops rows >= batch, covering both
    # the ragged final tile and fully out-of-range (clamped) tiles.
    g = c * nt_per_core + i
    row = g * tile_b + lax.broadcasted_iota(jnp.int32, (tile_b, 1), 0)
    valid = row < batch                                    # (TB, 1) bool

    # ---- supervised head: one fused (TB, 16) pass == loss_s1 + loss_s2 / row
    p = pred_ref[...].astype(jnp.float32)                  # (TB, 16)
    t = t16_ref[...].astype(jnp.float32)                   # (TB, 16)
    w = w16_ref[...]                                       # (1, 16) f32

    col = lax.broadcasted_iota(jnp.int32, p.shape, 1)
    is_mse = (col % N_COLS) < DIVIDE

    mse = (p - t) * (p - t)
    # F.binary_cross_entropy_with_logits (reduction='none'):
    #   max(x, 0) - x*y + log1p(exp(-|x|))
    bce = jnp.maximum(p, 0.0) - p * t + jnp.log1p(jnp.exp(-jnp.abs(p)))
    elem = jnp.where(is_mse, mse, bce)
    row_loss = jnp.sum(elem * w, axis=-1, keepdims=True)   # (TB, 1)
    acc1_ref[...] += jnp.sum(jnp.where(valid, row_loss, 0.0),
                             axis=0, keepdims=True)        # (1, 1)

    # ---- consistency head: running sum of (z1 - z2)^2 (scaled at the end)
    z = z_ref[...].astype(jnp.float32)                     # (TB, 768)
    d = z[:, :Z_DIM] - z[:, Z_DIM:]                        # lane-aligned split
    dd_row = jnp.sum(d * d, axis=-1, keepdims=True)        # (TB, 1)
    acc2_ref[...] += jnp.sum(jnp.where(valid, dd_row, 0.0),
                             axis=0, keepdims=True)        # (1, 1)

    @pl.when(i == pl.num_programs(1) - 1)
    def _finalize():
        # Lane-dense (1, 8, 128) output block: raw sum1 on sublane 0,
        # raw sum2 on sublane 1; scaled / combined across cores in the wrapper.
        sub = lax.broadcasted_iota(jnp.int32, out_ref.shape, 1)
        out_ref[...] = jnp.where(sub == 0, acc1_ref[...],
                                 jnp.where(sub == 1, acc2_ref[...], 0.0))


def mix_loss(z, pred, target, weights, *, tile_b=1024):
    """z: (2B, 384), pred: (2B, 8), target: (B, 8), weights: (8,)."""
    B = target.shape[0]
    # Contiguous reshapes only (no strided [:, 0, :] / [:, 1, :] HBM gathers).
    pred2 = pred.reshape(B, 2 * N_COLS)                    # [p1 | p2]
    z2d = z.reshape(B, 2 * Z_DIM)                          # [z1 | z2]
    t16 = jnp.tile(target, (1, 2))                         # (B, 16)  (tiny)
    w16 = jnp.tile(weights.reshape(1, N_COLS).astype(jnp.float32), (1, 2))

    TB = B if B <= tile_b else tile_b                      # TB == B or TB % 8 == 0
    nt_total = pl.cdiv(B, TB)
    NC = 2 if nt_total >= 2 else 1                         # megacore split (v7x)
    nt_per_core = pl.cdiv(nt_total, NC)

    def tile_idx(c, i):
        return (jnp.minimum(c * nt_per_core + i, nt_total - 1), 0)

    z_bytes = 4 * B * 2 * Z_DIM
    p_bytes = 4 * B * 2 * N_COLS
    cost = pl.CostEstimate(
        flops=3 * B * Z_DIM + 8 * B * 2 * N_COLS,
        transcendentals=2 * B * 2 * N_COLS,
        bytes_accessed=z_bytes + 3 * p_bytes + 4 * (2 * N_COLS + NC * 8 * 128),
    )

    out = pl.pallas_call(
        functools.partial(_mix_loss_kernel, nt_per_core=nt_per_core,
                          tile_b=TB, batch=B),
        out_shape=jax.ShapeDtypeStruct((NC, 8, 128), jnp.float32),
        grid_spec=pltpu.PrefetchScalarGridSpec(
            num_scalar_prefetch=0,
            grid=(NC, nt_per_core),
            in_specs=[
                pl.BlockSpec((TB, 2 * N_COLS), tile_idx),          # pred2
                pl.BlockSpec((TB, 2 * N_COLS), tile_idx),          # t16
                pl.BlockSpec((1, 2 * N_COLS), lambda c, i: (0, 0)),  # w16
                pl.BlockSpec((TB, 2 * Z_DIM), tile_idx),           # z2d
            ],
            out_specs=pl.BlockSpec((1, 8, 128), lambda c, i: (c, 0, 0)),
            scratch_shapes=[pltpu.VMEM((1, 1), jnp.float32),
                            pltpu.VMEM((1, 1), jnp.float32)],
        ),
        compiler_params=pltpu.CompilerParams(
            dimension_semantics=("parallel", "arbitrary"),
            vmem_limit_bytes=32 * 1024 * 1024,
        ),
        cost_estimate=cost,
    )(pred2, t16, w16, z2d)

    loss1 = jnp.sum(out[:, 0, 0]) / B
    loss2 = jnp.sum(out[:, 1, 0]) / (B * Z_DIM)
    return loss1, loss2


def _reference(z, pred, target, weights):
    pred3 = pred.reshape(-1, 2, N_COLS).astype(jnp.float32)
    t = target.astype(jnp.float32)
    w = weights.astype(jnp.float32)

    def mt(p):
        mse = (p - t) ** 2
        bce = jnp.maximum(p, 0.0) - p * t + jnp.log1p(jnp.exp(-jnp.abs(p)))
        col = jnp.arange(N_COLS)[None, :]
        elem = jnp.where(col < DIVIDE, mse, bce)
        return elem @ w

    s1 = mt(pred3[:, 0, :])
    s2 = mt(pred3[:, 1, :])
    loss1 = jnp.mean(s1 + s2)
    z3 = z.reshape(-1, 2, Z_DIM).astype(jnp.float32)
    loss2 = jnp.mean((z3[:, 0, :] - z3[:, 1, :]) ** 2)
    return loss1, loss2


if __name__ == "__main__":
    # Deterministic weights buffer (module's `weights` list, normalized).
    raw_w = jnp.arange(1.0, N_COLS + 1.0, dtype=jnp.float32)
    weights = raw_w / jnp.sum(raw_w)

    # Case 1: small batch, single tile, single core-slot (grid (1, 1)).
    key = jax.random.PRNGKey(0)
    k1, k2, k3 = jax.random.split(key, 3)
    B = 4
    pred = jax.random.normal(k1, (2 * B, N_COLS), dtype=jnp.float32)
    target = jax.random.uniform(k2, (B, N_COLS), dtype=jnp.float32)
    z = jax.random.normal(k3, (2 * B, Z_DIM), dtype=jnp.float32)

    loss1, loss2 = mix_loss(z, pred, target, weights)
    jax.block_until_ready((loss1, loss2))
    r1, r2 = _reference(z, pred, target, weights)
    assert jnp.allclose(loss1, r1, atol=1e-5, rtol=1e-5), (loss1, r1)
    assert jnp.allclose(loss2, r2, atol=1e-5, rtol=1e-5), (loss2, r2)

    # Case 2: ragged multi-tile batch exercising the 2-way core split, the
    # masked tail tile and the clamped out-of-range tile (grid (2, 2)).
    B2 = 20
    k4, k5, k6 = jax.random.split(jax.random.PRNGKey(1), 3)
    pred_b = jax.random.normal(k4, (2 * B2, N_COLS), dtype=jnp.float32)
    target_b = jax.random.uniform(k5, (B2, N_COLS), dtype=jnp.float32)
    z_b = jax.random.normal(k6, (2 * B2, Z_DIM), dtype=jnp.float32)

    l1b, l2b = mix_loss(z_b, pred_b, target_b, weights, tile_b=8)
    jax.block_until_ready((l1b, l2b))
    s1b, s2b = _reference(z_b, pred_b, target_b, weights)
    assert jnp.allclose(l1b, s1b, atol=1e-5, rtol=1e-5), (l1b, s1b)
    assert jnp.allclose(l2b, s2b, atol=1e-5, rtol=1e-5), (l2b, s2b)

    print("KERNEL_OK")
</pallas_src>

<mosaic_0001>
module attributes {stable_mosaic.version = 11 : i64} {
  func.func @_mix_loss_kernel(%arg0: i32, %arg1: i32, %arg2: memref<4x16xf32, #tpu.memory_space<vmem>>, %arg3: memref<4x16xf32, #tpu.memory_space<vmem>>, %arg4: memref<1x16xf32, #tpu.memory_space<vmem>>, %arg5: memref<4x768xf32, #tpu.memory_space<vmem>>, %arg6: memref<1x8x128xf32, #tpu.memory_space<vmem>>, %arg7: memref<1x1xf32, #tpu.memory_space<vmem>>, %arg8: memref<1x1xf32, #tpu.memory_space<vmem>>) attributes {dimension_semantics = [#tpu.dimension_semantics<parallel>, #tpu.dimension_semantics<arbitrary>], iteration_bounds = array<i64: 1, 1>, scalar_prefetch = 0 : i64, scratch_operands = 2 : i64, tpu.core_type = #tpu.core_type<tc>, window_params = [{transform_indices = @transform_0, window_bounds = array<i64: 4, 16>}, {transform_indices = @transform_1, window_bounds = array<i64: 4, 16>}, {pipeline_mode = #tpu.pipeline_mode<synchronous>, transform_indices = @transform_2, window_bounds = array<i64: 1, 16>}, {transform_indices = @transform_3, window_bounds = array<i64: 4, 768>}, {transform_indices = @transform_4, window_bounds = array<i64: 1, 8, 128>}]} {
    %c0_i32 = arith.constant 0 : i32
    %0 = arith.cmpi eq, %arg1, %c0_i32 : i32
    %1 = arith.extui %0 : i1 to i32
    %c0_i32_0 = arith.constant 0 : i32
    %2 = arith.cmpi ne, %1, %c0_i32_0 : i32
    scf.if %2 {
      %cst_31 = arith.constant 0.000000e+00 : f32
      %75 = vector.broadcast %cst_31 : f32 to vector<1x1xf32>
      %c0_32 = arith.constant 0 : index
      %c0_33 = arith.constant 0 : index
      %76 = vector.load %arg7[%c0_32, %c0_33] : memref<1x1xf32, #tpu.memory_space<vmem>>, vector<1x1xf32>
      tpu.vector_store %arg7[%c0_32, %c0_33], %75 {strides = array<i32>} : memref<1x1xf32, #tpu.memory_space<vmem>>, vector<1x1xf32>,
      %cst_34 = arith.constant 0.000000e+00 : f32
      %77 = vector.broadcast %cst_34 : f32 to vector<1x1xf32>
      %c0_35 = arith.constant 0 : index
      %c0_36 = arith.constant 0 : index
      %78 = vector.load %arg8[%c0_35, %c0_36] : memref<1x1xf32, #tpu.memory_space<vmem>>, vector<1x1xf32>
      tpu.vector_store %arg8[%c0_35, %c0_36], %77 {strides = array<i32>} : memref<1x1xf32, #tpu.memory_space<vmem>>, vector<1x1xf32>,
    } else {
    }
    %c1_i32 = arith.constant 1 : i32
    %3 = arith.muli %arg0, %c1_i32 : i32
    %4 = arith.addi %3, %arg1 : i32
    %c4_i32 = arith.constant 4 : i32
    %5 = arith.muli %4, %c4_i32 : i32
    %6 = tpu.iota {dimensions = array<i32: 0>} : vector<4x1xi32>
    %7 = vector.broadcast %5 : i32 to vector<4x1xi32>
    %8 = arith.addi %7, %6 : vector<4x1xi32>
    %c4_i32_1 = arith.constant 4 : i32
    %9 = vector.broadcast %c4_i32_1 : i32 to vector<4x1xi32>
    %10 = arith.cmpi slt, %8, %9 : vector<4x1xi32>
    %c0 = arith.constant 0 : index
    %c0_2 = arith.constant 0 : index
    %11 = vector.load %arg2[%c0, %c0_2] : memref<4x16xf32, #tpu.memory_space<vmem>>, vector<4x16xf32>
    %c0_3 = arith.constant 0 : index
    %c0_4 = arith.constant 0 : index
    %12 = vector.load %arg3[%c0_3, %c0_4] : memref<4x16xf32, #tpu.memory_space<vmem>>, vector<4x16xf32>
    %c0_5 = arith.constant 0 : index
    %c0_6 = arith.constant 0 : index
    %13 = vector.load %arg4[%c0_5, %c0_6] : memref<1x16xf32, #tpu.memory_space<vmem>>, vector<1x16xf32>
    %14 = tpu.iota {dimensions = array<i32: 1>} : vector<4x16xi32>
    %c8_i32 = arith.constant 8 : i32
    %c0_i32_7 = arith.constant 0 : i32
    %15 = arith.cmpi eq, %c8_i32, %c0_i32_7 : i32
    %c1_i32_8 = arith.constant 1 : i32
    %16 = arith.select %15, %c1_i32_8, %c8_i32 : i32
    %17 = vector.broadcast %16 : i32 to vector<4x16xi32>
    %18 = arith.remsi %14, %17 : vector<4x16xi32>
    %c0_i32_9 = arith.constant 0 : i32
    %19 = vector.broadcast %c0_i32_9 : i32 to vector<4x16xi32>
    %20 = arith.cmpi ne, %18, %19 : vector<4x16xi32>
    %c0_i32_10 = arith.constant 0 : i32
    %21 = vector.broadcast %c0_i32_10 : i32 to vector<4x16xi32>
    %22 = arith.cmpi slt, %18, %21 : vector<4x16xi32>
    %c0_i32_11 = arith.constant 0 : i32
    %23 = arith.cmpi slt, %16, %c0_i32_11 : i32
    %24 = vector.broadcast %23 : i1 to vector<4x16xi1>
    %25 = vector.broadcast %24 : vector<4x16xi1> to vector<4x16xi1>
    %26 = arith.xori %22, %25 : vector<4x16xi1>
    %27 = arith.andi %26, %20 : vector<4x16xi1>
    %28 = vector.broadcast %16 : i32 to vector<4x16xi32>
    %29 = arith.addi %18, %28 : vector<4x16xi32>
    %30 = arith.select %27, %29, %18 : vector<4x16xi1>, vector<4x16xi32>
    %c5_i32 = arith.constant 5 : i32
    %31 = vector.broadcast %c5_i32 : i32 to vector<4x16xi32>
    %32 = arith.cmpi slt, %30, %31 : vector<4x16xi32>
    %33 = arith.subf %11, %12 : vector<4x16xf32>
    %34 = arith.subf %11, %12 : vector<4x16xf32>
    %35 = arith.mulf %33, %34 : vector<4x16xf32>
    %cst = arith.constant 0.000000e+00 : f32
    %36 = vector.broadcast %cst : f32 to vector<4x16xf32>
    %37 = arith.maximumf %11, %36 : vector<4x16xf32>
    %38 = arith.mulf %11, %12 : vector<4x16xf32>
    %39 = arith.subf %37, %38 : vector<4x16xf32>
    %40 = math.absf %11 : vector<4x16xf32>
    %cst_12 = arith.constant 0.000000e+00 : f32
    %41 = vector.broadcast %cst_12 : f32 to vector<4x16xf32>
    %42 = arith.subf %41, %40 : vector<4x16xf32>
    %43 = math.exp %42 : vector<4x16xf32>
    %44 = math.log1p %43 : vector<4x16xf32>
    %45 = arith.addf %39, %44 : vector<4x16xf32>
    %46 = arith.select %32, %35, %45 : vector<4x16xi1>, vector<4x16xf32>
    %47 = vector.broadcast %13 : vector<1x16xf32> to vector<4x16xf32>
    %48 = arith.mulf %46, %47 : vector<4x16xf32>
    %cst_13 = arith.constant dense<0.000000e+00> : vector<4xf32>
    %49 = vector.multi_reduction <add>, %48, %cst_13 [1] : vector<4x16xf32> to vector<4xf32>
    %50 = vector.shape_cast %49 : vector<4xf32> to vector<4x1xf32>
    %c0_14 = arith.constant 0 : index
    %c0_15 = arith.constant 0 : index
    %51 = vector.load %arg7[%c0_14, %c0_15] : memref<1x1xf32, #tpu.memory_space<vmem>>, vector<1x1xf32>
    %cst_16 = arith.constant 0.000000e+00 : f32
    %52 = vector.broadcast %cst_16 : f32 to vector<4x1xf32>
    %53 = arith.select %10, %50, %52 : vector<4x1xi1>, vector<4x1xf32>
    %cst_17 = arith.constant dense<0.000000e+00> : vector<1xf32>
    %54 = vector.multi_reduction <add>, %53, %cst_17 [0] : vector<4x1xf32> to vector<1xf32>
    %55 = vector.shape_cast %54 : vector<1xf32> to vector<1x1xf32>
    %56 = arith.addf %51, %55 : vector<1x1xf32>
    %c0_18 = arith.constant 0 : index
    %c0_19 = arith.constant 0 : index
    %57 = vector.load %arg7[%c0_18, %c0_19] : memref<1x1xf32, #tpu.memory_space<vmem>>, vector<1x1xf32>
    tpu.vector_store %arg7[%c0_18, %c0_19], %56 {strides = array<i32>} : memref<1x1xf32, #tpu.memory_space<vmem>>, vector<1x1xf32>,
    %c0_20 = arith.constant 0 : index
    %c0_21 = arith.constant 0 : index
    %58 = vector.load %arg5[%c0_20, %c0_21] : memref<4x768xf32, #tpu.memory_space<vmem>>, vector<4x768xf32>
    %59 = vector.extract_strided_slice %58 {offsets = [0, 0], sizes = [4, 384], strides = [1, 1]} : vector<4x768xf32> to vector<4x384xf32>
    %60 = vector.extract_strided_slice %58 {offsets = [0, 384], sizes = [4, 384], strides = [1, 1]} : vector<4x768xf32> to vector<4x384xf32>
    %61 = arith.subf %59, %60 : vector<4x384xf32>
    %62 = arith.mulf %61, %61 : vector<4x384xf32>
    %cst_22 = arith.constant dense<0.000000e+00> : vector<4xf32>
    %63 = vector.multi_reduction <add>, %62, %cst_22 [1] : vector<4x384xf32> to vector<4xf32>
    %64 = vector.shape_cast %63 : vector<4xf32> to vector<4x1xf32>
    %c0_23 = arith.constant 0 : index
    %c0_24 = arith.constant 0 : index
    %65 = vector.load %arg8[%c0_23, %c0_24] : memref<1x1xf32, #tpu.memory_space<vmem>>, vector<1x1xf32>
    %cst_25 = arith.constant 0.000000e+00 : f32
    %66 = vector.broadcast %cst_25 : f32 to vector<4x1xf32>
    %67 = arith.select %10, %64, %66 : vector<4x1xi1>, vector<4x1xf32>
    %cst_26 = arith.constant dense<0.000000e+00> : vector<1xf32>
    %68 = vector.multi_reduction <add>, %67, %cst_26 [0] : vector<4x1xf32> to vector<1xf32>
    %69 = vector.shape_cast %68 : vector<1xf32> to vector<1x1xf32>
    %70 = arith.addf %65, %69 : vector<1x1xf32>
    %c0_27 = arith.constant 0 : index
    %c0_28 = arith.constant 0 : index
    %71 = vector.load %arg8[%c0_27, %c0_28] : memref<1x1xf32, #tpu.memory_space<vmem>>, vector<1x1xf32>
    tpu.vector_store %arg8[%c0_27, %c0_28], %70 {strides = array<i32>} : memref<1x1xf32, #tpu.memory_space<vmem>>, vector<1x1xf32>,
    %c0_i32_29 = arith.constant 0 : i32
    %72 = arith.cmpi eq, %arg1, %c0_i32_29 : i32
    %73 = arith.extui %72 : i1 to i32
    %c0_i32_30 = arith.constant 0 : i32
    %74 = arith.cmpi ne, %73, %c0_i32_30 : i32
    scf.if %74 {
      %75 = tpu.iota {dimensions = array<i32: 1>} : vector<1x8x128xi32>
      %c0_i32_31 = arith.constant 0 : i32
      %76 = vector.broadcast %c0_i32_31 : i32 to vector<1x8x128xi32>
      %77 = arith.cmpi eq, %75, %76 : vector<1x8x128xi32>
      %c0_32 = arith.constant 0 : index
      %c0_33 = arith.constant 0 : index
      %78 = vector.load %arg7[%c0_32, %c0_33] : memref<1x1xf32, #tpu.memory_space<vmem>>, vector<1x1xf32>
      %c1_i32_34 = arith.constant 1 : i32
      %79 = vector.broadcast %c1_i32_34 : i32 to vector<1x8x128xi32>
      %80 = arith.cmpi eq, %75, %79 : vector<1x8x128xi32>
      %c0_35 = arith.constant 0 : index
      %c0_36 = arith.constant 0 : index
      %81 = vector.load %arg8[%c0_35, %c0_36] : memref<1x1xf32, #tpu.memory_space<vmem>>, vector<1x1xf32>
      %cst_37 = arith.constant 0.000000e+00 : f32
      %82 = vector.shape_cast %81 : vector<1x1xf32> to vector<1x1x1xf32>
      %83 = vector.broadcast %82 : vector<1x1x1xf32> to vector<1x8x128xf32>
      %84 = vector.broadcast %cst_37 : f32 to vector<1x8x128xf32>
      %85 = arith.select %80, %83, %84 : vector<1x8x128xi1>, vector<1x8x128xf32>
      %86 = vector.shape_cast %78 : vector<1x1xf32> to vector<1x1x1xf32>
      %87 = vector.broadcast %86 : vector<1x1x1xf32> to vector<1x8x128xf32>
      %88 = arith.select %77, %87, %85 : vector<1x8x128xi1>, vector<1x8x128xf32>
      %c0_38 = arith.constant 0 : index
      %c0_39 = arith.constant 0 : index
      %c0_40 = arith.constant 0 : index
      %89 = vector.load %arg6[%c0_38, %c0_39, %c0_40] : memref<1x8x128xf32, #tpu.memory_space<vmem>>, vector<1x8x128xf32>
      tpu.vector_store %arg6[%c0_38, %c0_39, %c0_40], %88 {strides = array<i32>} : memref<1x8x128xf32, #tpu.memory_space<vmem>>, vector<1x8x128xf32>,
    } else {
    }
    return
  }
  func.func @transform_0(%arg0: i32, %arg1: i32) -> (i32, i32) {
    %c1_i32 = arith.constant 1 : i32
    %0 = arith.muli %arg0, %c1_i32 : i32
    %1 = arith.addi %0, %arg1 : i32
    %c0_i32 = arith.constant 0 : i32
    %2 = arith.minsi %1, %c0_i32 : i32
    %c0_i32_0 = arith.constant 0 : i32
    %c0_i32_1 = arith.constant 0 : i32
    return %2, %c0_i32_0 : i32, i32
  }
  func.func @transform_1(%arg0: i32, %arg1: i32) -> (i32, i32) {
    %c1_i32 = arith.constant 1 : i32
    %0 = arith.muli %arg0, %c1_i32 : i32
    %1 = arith.addi %0, %arg1 : i32
    %c0_i32 = arith.constant 0 : i32
    %2 = arith.minsi %1, %c0_i32 : i32
    %c0_i32_0 = arith.constant 0 : i32
    %c0_i32_1 = arith.constant 0 : i32
    return %2, %c0_i32_0 : i32, i32
  }
  func.func @transform_2(%arg0: i32, %arg1: i32) -> (i32, i32) {
    %c0_i32 = arith.constant 0 : i32
    %c0_i32_0 = arith.constant 0 : i32
    %c0_i32_1 = arith.constant 0 : i32
    return %c0_i32, %c0_i32_0 : i32, i32
  }
  func.func @transform_3(%arg0: i32, %arg1: i32) -> (i32, i32) {
    %c1_i32 = arith.constant 1 : i32
    %0 = arith.muli %arg0, %c1_i32 : i32
    %1 = arith.addi %0, %arg1 : i32
    %c0_i32 = arith.constant 0 : i32
    %2 = arith.minsi %1, %c0_i32 : i32
    %c0_i32_0 = arith.constant 0 : i32
    %c0_i32_1 = arith.constant 0 : i32
    return %2, %c0_i32_0 : i32, i32
  }
  func.func @transform_4(%arg0: i32, %arg1: i32) -> (i32, i32, i32) {
    %c0_i32 = arith.constant 0 : i32
    %c0_i32_0 = arith.constant 0 : i32
    %c0_i32_1 = arith.constant 0 : i32
    return %arg0, %c0_i32, %c0_i32_0 : i32, i32, i32
  }
}

</mosaic_0001>

<bundles_post_ra>
// kernel: tpu_custom_call.1
= control target key start
LH: loop header
LB: loop body
LE: loop exit
PB: predicated region body
PF: predicated region fallthrough
CT: control target
= control target key end

     0   :  { %9 = vsyncpa [#allocation5], 0  ;;  %s419_s0 = inlined_call_operand.hbm [shape: f32[4,16], index: 0, kind: input, shape index: {}]   ;;  %s420_s1 = inlined_call_operand.hbm [shape: f32[4,16], index: 1, kind: input, shape index: {}]   ;;  %s421_s2 = inlined_call_operand.vmem [shape: f32[1,16], index: 2, kind: input, shape index: {}]   ;;  %s422_s3 = inlined_call_operand.hbm [shape: f32[4,768], index: 3, kind: input, shape index: {}]   ;;  %s423_s4 = inlined_call_operand.hbm [shape: f32[1,8,128], index: 4, kind: output, shape index: {}]  }
   0x1   :  { %10 = vsyncpa [#allocation8], 0  ;;  %s38_s17 = sshll.u32 %s420_s1, 4  ;;  %s39_s17 = int_to_ptr.hbm [resolvable:$true] %s38_s17 }
   0x2   :  { %11 = vsyncpa [#allocation6], 0  ;;  %s363_s18 = smov [#allocation7]   ;;  %s22_s22 = sshll.u32 %s419_s0, 4  ;;  %s23_s22 = int_to_ptr.hbm [resolvable:$true] %s22_s22 }
   0x3   :  { %s40_s19 = sshll.u32 %s363_s18, 4  ;;  %s364_s23 = smov [#allocation4]   ;;  %s41_s19 = int_to_ptr.vmem [resolvable:$true] %s40_s19 }
   0x4   :  { %43 = dma.hbm_to_vmem [thread:$0]  %s39_s17, 64, %s41_s19, [#allocation8]  }
   0x5   :  { %s24_s24 = sshll.u32 %s364_s23, 4  ;;  %s57_s27 = sshll.u32 %s422_s3, 4  ;;  %s25_s24 = int_to_ptr.vmem [resolvable:$true] %s24_s24  ;;  %s58_s27 = int_to_ptr.hbm [resolvable:$true] %s57_s27 }
   0x6   :  { %27 = dma.hbm_to_vmem [thread:$0]  %s23_s22, 64, %s25_s24, [#allocation5]  }
   0x7   :  { %s365_s1 = smov [#allocation9]  }
   0x8   :  { %s59_s28 = sshll.u32 %s365_s1, 4  ;;  %s60_s28 = int_to_ptr.vmem [resolvable:$true] %s59_s28 }
   0x9   :  { %62 = dma.hbm_to_vmem [thread:$0]  %s58_s27, 384, %s60_s28, [#allocation8]  }
   0xa   :  { %357 = dma.done.wait [#allocation5], 64  }
   0xb   :  { %358 = vsyncadd [#allocation5], 4294967232 }
   0xc   :  { %359 = dma.done.wait [#allocation8], 448  }
   0xd   :  { %360 = vsyncadd [#allocation8], 4294966848  ;;  %vm146_vm0 = vcmask 1043456   ;;  %v158_v0 = vld [vmem:[#allocation9 + $0x8] sm:$0xff]  ;;  %v159_v1 = vld [vmem:[#allocation9 + $0x10] sm:$0xff]  ;;  %vm88_vm1 = vcmask 0   ;;  %v93_v19 = vlaneseq }
   0xe   :  { %v157_v2 = vld [vmem:[#allocation9] sm:$0xff]  ;;  %v162_v3 = vrot.slane %v158_v0, 4  ;;  %v163_v4 = vrot.slane %v159_v1, 4  ;;  %v98_v5 = vld [vmem:[#allocation4] sm:$0xf]  ;;  %v366_v11 = vmov 0.0  }
   0xf   :  { %v121_v6 = vand.u32 2147483647, %v98_v5  ;;  %90 = vst.msk [vmem:[#allocation3] sm:$0x1] %vm88_vm1, %v366_v11  ;;  %v99_v25 = vld [vmem:[#allocation7] sm:$0xf] }
  0x10   :  { %v164_v7 = vsel %vm146_vm0, %v162_v3, %v163_v4  ;;  %v168_v8 = vsub.f32 %v158_v0, %v163_v4  ;;  %89 = vst.msk [vmem:[#allocation2] sm:$0x1] %vm88_vm1, %v366_v11  ;;  %v102_v28 = vand.u32 127, %v93_v19  ;;  %v118_v30 = vmax.f32 %v98_v5, 0.0  ;;  %v254_v41 = vld [vmem:[%s421_s2] ss:$0 sm:$0xff] }
  0x11   :  { %v167_v9 = vsub.f32 %v157_v2, %v164_v7  ;;  %v122_v10 = vsub.f32 0.0, %v121_v6  ;;  %v119_v31 = vmul.f32 %v99_v25, %v98_v5  ;;  %v116_v33 = vsub.f32 %v98_v5, %v99_v25  ;;  %s368_s2 = smov [#allocation10]   ;;  %s229_s6 = sshll.u32 %s423_s4, 4  ;;  %s230_s6 = int_to_ptr.hbm [resolvable:$true] %s229_s6 }
  0x12   :  { %v170_v12 = vmul.f32 %v168_v8, %v168_v8  ;;  %v107_v34 = vand.u32 7, %v102_v28  ;;  %vm140_vm4 = vcmask 125952   ;;  %v94_v46 = vshrl.u32 %v93_v19, 7  ;;  %s227_s29 = sshll.u32 %s368_s2, 4  ;;  %s228_s29 = int_to_ptr.vmem [resolvable:$true] %s227_s29 }
  0x13   :  { %v169_v13 = vmul.f32 %v167_v9, %v167_v9  ;;  %v123_v14 = vmul.f32 1.442695, %v122_v10  ;;  %v120_v37 = vsub.f32 %v118_v30, %v119_v31  ;;  %v117_v39 = vmul.f32 %v116_v33, %v116_v33 }
  0x14   :  { %175 = vst [vmem:[#allocation1 + $0x10] ss:$2 sm:$0xff] %v170_v12  ;;  %vm115_vm3 = vcmp.lt.s32.totalorder %v107_v34, 5  ;;  %v367_v47 = vmov 0   ;;  %vm97_vm5 = vcmp.lt.s32.totalorder %v94_v46, 4  ;;  %vm205_vm6 = vcmp.eq.s32.totalorder %v94_v46, 1 }
  0x15   :  { %173 = vst [vmem:[#allocation1] ss:$2 sm:$0xff] %v169_v13  ;;  %257 = vpow2.f32 %v123_v14  ;;  %252 = vset.pattern.permute.xlu1 %v367_v47  ;;  %253 = vset.pattern.permute.xlu0 %v367_v47  ;;  %vm203_vm7 = vcmp.eq.s32.totalorder %v94_v46, 0 }
  0x16   :  { %v189_v56 = vld [vmem:[#allocation3] sm:$0x1] }
  0x17   :  { %v144_v4 = vld [vmem:[#allocation2] sm:$0x1] }
  0x1b   :  { %v258_v15 = vpop.eup %257  ;;  %v178_v16 = vld.sshfl [vmem:[#allocation1 + $0x10] sm:$0xff pattern:$0x75316420] }
  0x1c   :  { %v176_v17 = vld.sshfl [vmem:[#allocation1] sm:$0xff pattern:$0x75316420]  ;;  %v177_v18 = vld.sshfl [vmem:[#allocation1 + $0x8] sm:$0xff pattern:$0x75316420] }
  0x1d   :  { %v182_v20 = vsel %vm146_vm0, %v176_v17, 0.0  ;;  %v183_v21 = vsel %vm146_vm0, %v177_v18, 0.0  ;;  %v185_v22 = vsel %vm146_vm0, %v178_v16, 0.0  ;;  %v125_v23 = vadd.f32 1.0, %v258_v15 }
  0x1e   :  { %v184_v24 = vadd.f32 %v183_v21, %v182_v20  ;;  %v128_v26 = vmul.f32 -0.5, %v258_v15  ;;  %v131_v32 = vand.u32 2147483647, %v258_v15 }
  0x1f   :  { %259 = vlog2.f32 %v125_v23 }
  0x20   :  { %v186_v27 = vadd.f32 %v185_v22, %v184_v24  ;;  %v129_v29 = vadd.f32 1.0, %v128_v26  ;;  %vm132_vm2 = vcmp.lt.f32.partialorder %v131_v32, 0.0004427343 }
  0x22   :  { %187 = vadd.xlane.f32.xlu0 %v186_v27  ;;  %v130_v35 = vmul.f32 %v258_v15, %v129_v29 }
  0x25   :  { %v260_v36 = vpop.eup %259 }
  0x26   :  { %v127_v38 = vmul.f32 0.6931472, %v260_v36 }
  0x28   :  { %v133_v40 = vsel %vm132_vm2, %v130_v35, %v127_v38 }
  0x29   :  { %v134_v42 = vadd.f32 %v133_v40, %v120_v37 }
  0x2b   :  { %v135_v43 = vsel %vm115_vm3, %v117_v39, %v134_v42 }
  0x2c   :  { %v139_v44 = vmul.f32 %v254_v41, %v135_v43 }
  0x2e   :  { %v141_v45 = vsel %vm140_vm4, %v139_v44, 0.0 }
  0x2f   :  { %142 = vadd.xlane.f32.xlu0 %v141_v45 }
  0x95   :  { %v188_v48 = vpop.xlane.xlu0 %187 }
  0x96   :  { %v190_v49 = vsel %vm97_vm5, %v188_v48, 0.0 }
  0x97   :  { %v191_v50 = vsel %vm146_vm0, %v190_v49, 0.0 }
  0x98   :  { %v192_v51 = vrot.slane %v191_v50, 4 }
  0x9a   :  { %v193_v52 = vadd.f32 %v192_v51, %v191_v50 }
  0x9c   :  { %v194_v53 = vrot.slane %v193_v52, 2 }
  0x9e   :  { %v195_v54 = vadd.f32 %v194_v53, %v193_v52 }
  0xa0   :  { %v196_v55 = vrot.slane %v195_v54, 1 }
  0xa2   :  { %v197_v57 = vadd.f32 %v196_v55, %v195_v54  ;;  %v143_v58 = vpop.xlane.xlu0 %142 }
  0xa3   :  { %v145_v59 = vsel %vm97_vm5, %v143_v58, 0.0 }
  0xa4   :  { %v198_v60 = vadd.f32 %v197_v57, %v189_v56  ;;  %v147_v61 = vsel %vm146_vm0, %v145_v59, 0.0 }
  0xa5   :  { %v148_v62 = vrot.slane %v147_v61, 4 }
  0xa6   :  { %199 = vst.msk [vmem:[#allocation3] sm:$0x1] %vm88_vm1, %v198_v60 }
  0xa7   :  { %v149_v63 = vadd.f32 %v148_v62, %v147_v61 }
  0xa9   :  { %v150_v0 = vrot.slane %v149_v63, 2 }
  0xab   :  { %v151_v1 = vadd.f32 %v150_v0, %v149_v63 }
  0xad   :  { %v152_v2 = vrot.slane %v151_v1, 1  ;;  %v255_v3 = vld [vmem:[#allocation3] ss:$0 sm:$0xff] }
  0xae   :  { %210 = vperm.xlu1 %252, %v255_v3  }
  0xaf   :  { %v153_v5 = vadd.f32 %v152_v2, %v151_v1 }
  0xb1   :  { %v154_v6 = vadd.f32 %v153_v5, %v144_v4 }
  0xb3   :  { %156 = vst.msk [vmem:[#allocation2] sm:$0x1] %vm88_vm1, %v154_v6 }
  0xba   :  { %v256_v7 = vld [vmem:[#allocation2] ss:$0 sm:$0xff] }
  0xbb   :  { %217 = vperm.xlu1 %252, %v256_v7  }
 0x120   :  { %v211_v8 = vpop.permute.xlu1 %210 }
 0x121   :  { %v213_v9 = vsel %vm205_vm6, %v211_v8, 0.0 }
 0x12d   :  { %v218_v10 = vpop.permute.xlu1 %217 }
 0x12e   :  { %v220_v11 = vsel %vm203_vm7, %v218_v10, %v213_v9 }
 0x12f   :  { %221 = vst [vmem:[#allocation10] sm:$0xff] %v220_v11 }
 0x130   :  { %232 = dma.vmem_to_hbm [thread:$0]  %s228_s29, 128, %s230_s6, [#allocation6]  }
 0x131   :  { %361 = dma.done.wait [#allocation6], 128  }
 0x132   :  { %362 = vsyncadd [#allocation6], 4294967168 }
 0x133   :  { %237 = vsyncpa [#allocation5], 1 }
 0x134   :  { %238 = vsyncpa [#allocation8], 1 }
 0x135   :  { %239 = vsyncpa [#allocation6], 1 }

</bundles_post_ra>
